<compile_context>
chip_gen: v7x
topology: tpu7x:2x2x1
jax: 0.10.0
libtpu: 0.0.40
codegen_flags: <defaults>
</compile_context>

<pallas_src>
import jax
import jax.numpy as jnp
from jax.experimental import pallas as pl
from jax.experimental.pallas import tpu as pltpu


def conv1x1_kernel(w_ref, x_ref, o_ref):
    # w_ref: (Cout, Cin) bf16, x_ref: (Cin, HW) bf16 -> o_ref: (Cout, HW) f32
    o_ref[...] = jnp.dot(
        w_ref[...], x_ref[...], preferred_element_type=jnp.float32
    ).astype(o_ref.dtype)


def conv2d_1x1(x_nchw, weight_oihw):
    """1x1 conv, stride 1, no bias. x: (N, Cin, H, W), weight: (Cout, Cin, 1, 1)."""
    N, Cin, H, W = x_nchw.shape
    Cout = weight_oihw.shape[0]
    HW = H * W

    # Zero-copy views (no transposes), then a bf16 cast of the operands.
    x3d = x_nchw.reshape(N, Cin, HW).astype(jnp.bfloat16)
    w2d = weight_oihw.reshape(Cout, Cin).astype(jnp.bfloat16)

    out3d = pl.pallas_call(
        conv1x1_kernel,
        out_shape=jax.ShapeDtypeStruct((N, Cout, HW), x_nchw.dtype),
        grid=(N,),
        in_specs=[
            # Weight is grid-invariant (resident across the N axis).
            pl.BlockSpec((Cout, Cin), lambda n: (0, 0)),
            # Full (Cin, HW) slab per batch element; batch dim squeezed away.
            pl.BlockSpec((pl.Squeezed(), Cin, HW), lambda n: (n, 0, 0)),
        ],
        out_specs=pl.BlockSpec((pl.Squeezed(), Cout, HW), lambda n: (n, 0, 0)),
        compiler_params=pltpu.CompilerParams(
            dimension_semantics=("parallel",),
        ),
    )(w2d, x3d)

    # (N, Cout, HW) -> (N, Cout, H, W) is a zero-copy reshape (already NCHW).
    return out3d.reshape(N, Cout, H, W)


if __name__ == "__main__":
    key = jax.random.PRNGKey(0)
    kx, kw = jax.random.split(key)

    # Shapes implied by the module: x271 is (1, 816, 14, 14), conv is 816 -> 136.
    N, Cin, H, W = 1, 816, 14, 14
    Cout = 136

    x = jax.random.normal(kx, (N, Cin, H, W), dtype=jnp.float32)
    weight = jax.random.normal(kw, (Cout, Cin, 1, 1), dtype=jnp.float32) * 0.02

    out = jax.block_until_ready(conv2d_1x1(x, weight))

    # Reference using the same bf16-rounded operands with f32 accumulation,
    # so the comparison stays tight despite the bf16 cast inside the wrapper.
    x_b = x.astype(jnp.bfloat16).astype(jnp.float32)
    w_b = weight.reshape(Cout, Cin).astype(jnp.bfloat16).astype(jnp.float32)
    ref = jnp.einsum("nchw,oc->nohw", x_b, w_b)

    assert out.shape == (N, Cout, H, W), out.shape
    assert jnp.allclose(out, ref, atol=1e-3, rtol=1e-3), float(
        jnp.max(jnp.abs(out - ref))
    )
    # Loose sanity check against the full-f32 math as well.
    ref_f32 = jnp.einsum("nchw,oc->nohw", x, weight.reshape(Cout, Cin))
    assert jnp.allclose(out, ref_f32, atol=5e-2, rtol=5e-2)

    print("KERNEL_OK")
</pallas_src>

<mosaic_0001>
module attributes {stable_mosaic.version = 11 : i64} {
  func.func @conv1x1_kernel(%arg0: i32, %arg1: memref<136x816xbf16, #tpu.memory_space<vmem>>, %arg2: memref<1x816x196xbf16, #tpu.memory_space<vmem>>, %arg3: memref<1x136x196xf32, #tpu.memory_space<vmem>>) attributes {dimension_semantics = [#tpu.dimension_semantics<parallel>], iteration_bounds = array<i64: 1>, scalar_prefetch = 0 : i64, scratch_operands = 0 : i64, tpu.core_type = #tpu.core_type<tc>, window_params = [{pipeline_mode = #tpu.pipeline_mode<synchronous>, transform_indices = @transform_0, window_bounds = array<i64: 136, 816>}, {transform_indices = @transform_1, window_bounds = array<i64: 1, 816, 196>}, {transform_indices = @transform_2, window_bounds = array<i64: 1, 136, 196>}]} {
    %c0 = arith.constant 0 : index
    %c0_0 = arith.constant 0 : index
    %0 = vector.load %arg1[%c0, %c0_0] : memref<136x816xbf16, #tpu.memory_space<vmem>>, vector<136x816xbf16>
    %c0_1 = arith.constant 0 : index
    %c0_2 = arith.constant 0 : index
    %c0_3 = arith.constant 0 : index
    %1 = vector.load %arg2[%c0_1, %c0_2, %c0_3] : memref<1x816x196xbf16, #tpu.memory_space<vmem>>, vector<1x816x196xbf16>
    %2 = vector.shape_cast %1 : vector<1x816x196xbf16> to vector<816x196xbf16>
    %cst = arith.constant dense<0.000000e+00> : vector<136x196xf32>
    %3 = tpu.matmul %0, %2, %cst {dimension_numbers = #tpu.dot_dimension_numbers<[1], [0], [0], [1], [0, 0, 1, 1], [], []>} : vector<136x816xbf16>, vector<816x196xbf16>, vector<136x196xf32> -> vector<136x196xf32>
    %c0_4 = arith.constant 0 : index
    %c0_5 = arith.constant 0 : index
    %c0_6 = arith.constant 0 : index
    %4 = vector.load %arg3[%c0_4, %c0_5, %c0_6] : memref<1x136x196xf32, #tpu.memory_space<vmem>>, vector<1x136x196xf32>
    %5 = vector.shape_cast %4 : vector<1x136x196xf32> to vector<136x196xf32>
    %6 = vector.shape_cast %3 : vector<136x196xf32> to vector<1x136x196xf32>
    tpu.vector_store %arg3[%c0_4, %c0_5, %c0_6], %6 {strides = array<i32>} : memref<1x136x196xf32, #tpu.memory_space<vmem>>, vector<1x136x196xf32>,
    return
  }
  func.func @transform_0(%arg0: i32) -> (i32, i32) {
    %c0_i32 = arith.constant 0 : i32
    %c0_i32_0 = arith.constant 0 : i32
    %c0_i32_1 = arith.constant 0 : i32
    return %c0_i32, %c0_i32_0 : i32, i32
  }
  func.func @transform_1(%arg0: i32) -> (i32, i32, i32) {
    %c0_i32 = arith.constant 0 : i32
    %c0_i32_0 = arith.constant 0 : i32
    %c0_i32_1 = arith.constant 0 : i32
    return %arg0, %c0_i32, %c0_i32_0 : i32, i32, i32
  }
  func.func @transform_2(%arg0: i32) -> (i32, i32, i32) {
    %c0_i32 = arith.constant 0 : i32
    %c0_i32_0 = arith.constant 0 : i32
    %c0_i32_1 = arith.constant 0 : i32
    return %arg0, %c0_i32, %c0_i32_0 : i32, i32, i32
  }
}

</mosaic_0001>

<bundles_post_ra>
// kernel: tpu_custom_call.1
= control target key start
LH: loop header
LB: loop body
LE: loop exit
PB: predicated region body
PF: predicated region fallthrough
CT: control target
= control target key end

     0   :  { %s2651_s0 = inlined_call_operand.vmem [shape: bf16[136,816], index: 0, kind: input, shape index: {}]   ;;  %s2652_s1 = inlined_call_operand.vmem [shape: bf16[1,816,196], index: 1, kind: input, shape index: {}]   ;;  %s2653_s2 = inlined_call_operand.hbm [shape: f32[1,136,196], index: 2, kind: output, shape index: {}]  }
   0x1   :  { %v1844_v0 = vld [vmem:[%s2652_s1 + $0x4] ss:$8 sps:$4 sm:$0xff]   ;;  %v1848_v2 = vld [vmem:[%s2652_s1] ss:$8 sps:$4 sm:$0xff]   ;;  %v1850_v4 = vld [vmem:[%s2652_s1 + $0x14] ss:$8 sps:$4 sm:$0xff]  }
   0x2   :  { %v1846_v1 = vld [vmem:[%s2652_s1 + $0x204] ss:$8 sps:$4 sm:$0xff]   ;;  %1025 = vmatprep.subr.bf16.mxu1 %v1844_v0  ;;  %v1849_v3 = vld [vmem:[%s2652_s1 + $0x200] ss:$8 sps:$4 sm:$0xff]   ;;  %v1852_v5 = vld [vmem:[%s2652_s1 + $0x214] ss:$8 sps:$4 sm:$0xff]  }
   0x3   :  { %1267 = vmatprep.subr.bf16.mxu0 %v1846_v1  ;;  %1026 = vmatpush1.bf16.msra.mxu1 %v1848_v2  ;;  %v1854_v6 = vld [vmem:[%s2652_s1 + $0x10] ss:$8 sps:$4 sm:$0xff]   ;;  %v1856_v8 = vld [vmem:[%s2652_s1 + $0x24] ss:$8 sps:$4 sm:$0xff]   ;;  %v1860_v10 = vld [vmem:[%s2652_s1 + $0x20] ss:$8 sps:$4 sm:$0xff]  }
   0x4   :  { %1268 = vmatpush1.bf16.msra.mxu0 %v1849_v3  ;;  %1027 = vmatprep.subr.bf16.mxu1 %v1850_v4  ;;  %v1855_v7 = vld [vmem:[%s2652_s1 + $0x210] ss:$8 sps:$4 sm:$0xff]   ;;  %v1858_v9 = vld [vmem:[%s2652_s1 + $0x224] ss:$8 sps:$4 sm:$0xff]   ;;  %v1861_v11 = vld [vmem:[%s2652_s1 + $0x220] ss:$8 sps:$4 sm:$0xff]  }
   0x5   :  { %1269 = vmatprep.subr.bf16.mxu0 %v1852_v5  ;;  %v1862_v12 = vld [vmem:[%s2652_s1 + $0x34] ss:$8 sps:$4 sm:$0xff]   ;;  %v1866_v14 = vld [vmem:[%s2652_s1 + $0x30] ss:$8 sps:$4 sm:$0xff]   ;;  %v1868_v16 = vld [vmem:[%s2652_s1 + $0x44] ss:$8 sps:$4 sm:$0xff]  }
   0x6   :  { %v1864_v13 = vld [vmem:[%s2652_s1 + $0x234] ss:$8 sps:$4 sm:$0xff]   ;;  %v1867_v15 = vld [vmem:[%s2652_s1 + $0x230] ss:$8 sps:$4 sm:$0xff]   ;;  %v1870_v17 = vld [vmem:[%s2652_s1 + $0x244] ss:$8 sps:$4 sm:$0xff]  }
   0x7   :  { %1028 = vmatpush1.bf16.msra.mxu1 %v1854_v6  ;;  %v1872_v18 = vld [vmem:[%s2652_s1 + $0x40] ss:$8 sps:$4 sm:$0xff]   ;;  %v1874_v20 = vld [vmem:[%s2652_s1 + $0x54] ss:$8 sps:$4 sm:$0xff]   ;;  %v1878_v22 = vld [vmem:[%s2652_s1 + $0x50] ss:$8 sps:$4 sm:$0xff]  }
   0x8   :  { %1270 = vmatpush1.bf16.msra.mxu0 %v1855_v7  ;;  %1029 = vmatprep.subr.bf16.mxu1 %v1856_v8  ;;  %v1873_v19 = vld [vmem:[%s2652_s1 + $0x240] ss:$8 sps:$4 sm:$0xff]   ;;  %v1876_v21 = vld [vmem:[%s2652_s1 + $0x254] ss:$8 sps:$4 sm:$0xff]   ;;  %v1879_v23 = vld [vmem:[%s2652_s1 + $0x250] ss:$8 sps:$4 sm:$0xff]  }
   0x9   :  { %1271 = vmatprep.subr.bf16.mxu0 %v1858_v9  ;;  %v1880_v24 = vld [vmem:[%s2652_s1 + $0x64] ss:$8 sps:$4 sm:$0xff]   ;;  %v1884_v26 = vld [vmem:[%s2652_s1 + $0x60] ss:$8 sps:$4 sm:$0xff]   ;;  %v1886_v28 = vld [vmem:[%s2652_s1 + $0x74] ss:$8 sps:$4 sm:$0xff]  }
   0xa   :  { %v1882_v25 = vld [vmem:[%s2652_s1 + $0x264] ss:$8 sps:$4 sm:$0xff]   ;;  %v1885_v27 = vld [vmem:[%s2652_s1 + $0x260] ss:$8 sps:$4 sm:$0xff]   ;;  %v1888_v29 = vld [vmem:[%s2652_s1 + $0x274] ss:$8 sps:$4 sm:$0xff]  }
   0xb   :  { %1030 = vmatpush1.bf16.msra.mxu1 %v1860_v10  ;;  %v1890_v30 = vld [vmem:[%s2652_s1 + $0x70] ss:$8 sps:$4 sm:$0xff]   ;;  %v1892_v32 = vld [vmem:[%s2652_s1 + $0x84] ss:$8 sps:$4 sm:$0xff]   ;;  %v1896_v34 = vld [vmem:[%s2652_s1 + $0x80] ss:$8 sps:$4 sm:$0xff]  }
   0xc   :  { %1272 = vmatpush1.bf16.msra.mxu0 %v1861_v11  ;;  %1031 = vmatprep.subr.bf16.mxu1 %v1862_v12  ;;  %v1891_v31 = vld [vmem:[%s2652_s1 + $0x270] ss:$8 sps:$4 sm:$0xff]   ;;  %v1894_v33 = vld [vmem:[%s2652_s1 + $0x284] ss:$8 sps:$4 sm:$0xff]   ;;  %v1897_v35 = vld [vmem:[%s2652_s1 + $0x280] ss:$8 sps:$4 sm:$0xff]  }
   0xd   :  { %1273 = vmatprep.subr.bf16.mxu0 %v1864_v13  ;;  %v1898_v36 = vld [vmem:[%s2652_s1 + $0x94] ss:$8 sps:$4 sm:$0xff]   ;;  %v1902_v38 = vld [vmem:[%s2652_s1 + $0x90] ss:$8 sps:$4 sm:$0xff]   ;;  %v1904_v40 = vld [vmem:[%s2652_s1 + $0xa4] ss:$8 sps:$4 sm:$0xff]  }
   0xe   :  { %v1900_v37 = vld [vmem:[%s2652_s1 + $0x294] ss:$8 sps:$4 sm:$0xff]   ;;  %v1903_v39 = vld [vmem:[%s2652_s1 + $0x290] ss:$8 sps:$4 sm:$0xff]   ;;  %v1906_v41 = vld [vmem:[%s2652_s1 + $0x2a4] ss:$8 sps:$4 sm:$0xff]  }
   0xf   :  { %1032 = vmatpush1.bf16.msra.mxu1 %v1866_v14  ;;  %v1908_v42 = vld [vmem:[%s2652_s1 + $0xa0] ss:$8 sps:$4 sm:$0xff]   ;;  %v1910_v44 = vld [vmem:[%s2652_s1 + $0xb4] ss:$8 sps:$4 sm:$0xff]   ;;  %v1914_v46 = vld [vmem:[%s2652_s1 + $0xb0] ss:$8 sps:$4 sm:$0xff]  }
  0x10   :  { %1274 = vmatpush1.bf16.msra.mxu0 %v1867_v15  ;;  %1033 = vmatprep.subr.bf16.mxu1 %v1868_v16  ;;  %v1909_v43 = vld [vmem:[%s2652_s1 + $0x2a0] ss:$8 sps:$4 sm:$0xff]   ;;  %v1912_v45 = vld [vmem:[%s2652_s1 + $0x2b4] ss:$8 sps:$4 sm:$0xff]   ;;  %v1915_v47 = vld [vmem:[%s2652_s1 + $0x2b0] ss:$8 sps:$4 sm:$0xff]  }
  0x11   :  { %1275 = vmatprep.subr.bf16.mxu0 %v1870_v17  ;;  %v1916_v48 = vld [vmem:[%s2652_s1 + $0xc4] ss:$8 sps:$4 sm:$0xff]   ;;  %v1945_v51 = vld [vmem:[%s2651_s0 + $0x14] ss:$28 sps:$4 sm:$0xff]   ;;  %v1920_v52 = vld [vmem:[%s2652_s1 + $0xc0] ss:$8 sps:$4 sm:$0xff]  }
  0x12   :  { %v1942_v49 = vld [vmem:[%s2651_s0 + $0x4] ss:$28 sps:$4 sm:$0xff]   ;;  %1299 = vmatprep.mubr.bf16.mxu0 %v1945_v51  ;;  %v1922_v54 = vld [vmem:[%s2652_s1 + $0xd4] ss:$8 sps:$4 sm:$0xff]   ;;  %v1926_v56 = vld [vmem:[%s2652_s1 + $0xd0] ss:$8 sps:$4 sm:$0xff]  }
  0x13   :  { %1034 = vmatpush1.bf16.msra.mxu1 %v1872_v18  ;;  %v1918_v50 = vld [vmem:[%s2652_s1 + $0x2c4] ss:$8 sps:$4 sm:$0xff]   ;;  %1057 = vmatprep.mubr.bf16.mxu1 %v1942_v49  ;;  %v1921_v53 = vld [vmem:[%s2652_s1 + $0x2c0] ss:$8 sps:$4 sm:$0xff]   ;;  %v1924_v55 = vld [vmem:[%s2652_s1 + $0x2d4] ss:$8 sps:$4 sm:$0xff]  }
  0x14   :  { %1276 = vmatpush1.bf16.msra.mxu0 %v1873_v19  ;;  %1035 = vmatprep.subr.bf16.mxu1 %v1874_v20  ;;  %v1927_v57 = vld [vmem:[%s2652_s1 + $0x2d0] ss:$8 sps:$4 sm:$0xff]   ;;  %v1928_v58 = vld [vmem:[%s2652_s1 + $0xe4] ss:$8 sps:$4 sm:$0xff]   ;;  %v1932_v60 = vld [vmem:[%s2652_s1 + $0xe0] ss:$8 sps:$4 sm:$0xff]  }
  0x15   :  { %1277 = vmatprep.subr.bf16.mxu0 %v1876_v21  ;;  %v1930_v59 = vld [vmem:[%s2652_s1 + $0x2e4] ss:$8 sps:$4 sm:$0xff]   ;;  %v1933_v61 = vld [vmem:[%s2652_s1 + $0x2e0] ss:$8 sps:$4 sm:$0xff]   ;;  %v1934_v62 = vld [vmem:[%s2652_s1 + $0xf4] ss:$8 sps:$4 sm:$0xff]  }
  0x16   :  { %v1936_v63 = vld [vmem:[%s2652_s1 + $0x2f4] ss:$8 sps:$4 sm:$0xff]   ;;  %v1938_v0 = vld [vmem:[%s2652_s1 + $0xf0] ss:$8 sps:$4 sm:$0xff]   ;;  %v1948_v2 = vld [vmem:[%s2652_s1 + $0x104] ss:$8 sps:$4 sm:$0xff]  }
  0x17   :  { %1036 = vmatpush1.bf16.msra.mxu1 %v1878_v22  ;;  %v1939_v1 = vld [vmem:[%s2652_s1 + $0x2f0] ss:$8 sps:$4 sm:$0xff]   ;;  %v1940_v3 = vld [vmem:[%s2651_s0] ss:$28 sps:$4 sm:$0xff]   ;;  %v1951_v4 = vld [vmem:[%s2652_s1 + $0x304] ss:$8 sps:$4 sm:$0xff]  }
  0x18   :  { %1278 = vmatpush1.bf16.msra.mxu0 %v1879_v23  ;;  %1037 = vmatprep.subr.bf16.mxu1 %v1880_v24  ;;  %v1943_v5 = vld [vmem:[%s2651_s0 + $0x10] ss:$28 sps:$4 sm:$0xff]   ;;  %v1946_v6 = vld [vmem:[%s2652_s1 + $0x100] ss:$8 sps:$4 sm:$0xff]   ;;  %v1954_v8 = vld [vmem:[%s2652_s1 + $0x114] ss:$8 sps:$4 sm:$0xff]  }
  0x19   :  { %1279 = vmatprep.subr.bf16.mxu0 %v1882_v25  ;;  %v1949_v7 = vld [vmem:[%s2652_s1 + $0x300] ss:$8 sps:$4 sm:$0xff]   ;;  %v1955_v9 = vld [vmem:[%s2651_s0 + $0x3c] ss:$28 sps:$4 sm:$0xff]   ;;  %v1963_v14 = vld [vmem:[%s2652_s1 + $0x124] ss:$8 sps:$4 sm:$0xff]  }
  0x1a   :  { %v1957_v10 = vld [vmem:[%s2651_s0 + $0x4c] ss:$28 sps:$4 sm:$0xff]   ;;  %v1987_v11 = vld [vmem:[%s2652_s1 + $0x314] ss:$8 sps:$4 sm:$0xff]   ;;  %v1952_v12 = vld [vmem:[%s2652_s1 + $0x110] ss:$8 sps:$4 sm:$0xff]  }
  0x1b   :  { %1038 = vmatpush1.bf16.msra.mxu1 %v1884_v26  ;;  %v1985_v13 = vld [vmem:[%s2652_s1 + $0x310] ss:$8 sps:$4 sm:$0xff]   ;;  %v1960_v16 = vld [vmem:[%s2651_s0 + $0x48] ss:$28 sps:$4 sm:$0xff]   ;;  %v1966_v18 = vld [vmem:[%s2652_s1 + $0x134] ss:$8 sps:$4 sm:$0xff]  }
  0x1c   :  { %1280 = vmatpush1.bf16.msra.mxu0 %v1885_v27  ;;  %1039 = vmatprep.subr.bf16.mxu1 %v1886_v28  ;;  %v1959_v15 = vld [vmem:[%s2651_s0 + $0x38] ss:$28 sps:$4 sm:$0xff]   ;;  %v1961_v17 = vld [vmem:[%s2652_s1 + $0x120] ss:$8 sps:$4 sm:$0xff]   ;;  %v1971_v22 = vld [vmem:[%s2651_s0 + $0x70] ss:$28 sps:$4 sm:$0xff]  }
  0x1d   :  { %1281 = vmatprep.subr.bf16.mxu0 %v1888_v29  ;;  %v1967_v19 = vld [vmem:[%s2651_s0 + $0x74] ss:$28 sps:$4 sm:$0xff]   ;;  %v1969_v20 = vld [vmem:[%s2651_s0 + $0x84] ss:$28 sps:$4 sm:$0xff]   ;;  %v1976_v26 = vld [vmem:[%s2651_s0 + $0xac] ss:$28 sps:$4 sm:$0xff]  }
  0x1e   :  { %v1964_v21 = vld [vmem:[%s2652_s1 + $0x130] ss:$8 sps:$4 sm:$0xff]   ;;  %v1972_v23 = vld [vmem:[%s2651_s0 + $0x80] ss:$28 sps:$4 sm:$0xff]   ;;  %v1975_v24 = vld [vmem:[%s2652_s1 + $0x144] ss:$8 sps:$4 sm:$0xff]  }
  0x1f   :  { %1040 = vmatpush1.bf16.msra.mxu1 %v1890_v30  ;;  %v1973_v25 = vld [vmem:[%s2652_s1 + $0x140] ss:$8 sps:$4 sm:$0xff]   ;;  %v2023_v28 = vld [vmem:[%s2652_s1 + $0x324] ss:$8 sps:$4 sm:$0xff]   ;;  %v1980_v29 = vld [vmem:[%s2652_s1 + $0x154] ss:$8 sps:$4 sm:$0xff]  }
  0x20   :  { %1282 = vmatpush1.bf16.msra.mxu0 %v1891_v31  ;;  %1041 = vmatprep.subr.bf16.mxu1 %v1892_v32  ;;  %v2021_v27 = vld [vmem:[%s2652_s1 + $0x320] ss:$8 sps:$4 sm:$0xff]   ;;  %v1981_v30 = vld [vmem:[%s2651_s0 + $0xbc] ss:$28 sps:$4 sm:$0xff]   ;;  %v1990_v32 = vld [vmem:[%s2652_s1 + $0x164] ss:$8 sps:$4 sm:$0xff]  }
  0x21   :  { %1283 = vmatprep.subr.bf16.mxu0 %v1894_v33  ;;  %v1978_v31 = vld [vmem:[%s2652_s1 + $0x150] ss:$8 sps:$4 sm:$0xff]   ;;  %v1983_v33 = vld [vmem:[%s2651_s0 + $0xa8] ss:$28 sps:$4 sm:$0xff]  }
  0x22   :  { %v2014_v49 = vld [vmem:[%s2652_s1 + $0x1a4] ss:$8 sps:$4 sm:$0xff]   ;;  %v2012_v51 = vld [vmem:[%s2652_s1 + $0x1a0] ss:$8 sps:$4 sm:$0xff]  }
  0x23   :  { %1042 = vmatpush1.bf16.msra.mxu1 %v1896_v34  ;;  %v1984_v34 = vld [vmem:[%s2651_s0 + $0xb8] ss:$28 sps:$4 sm:$0xff]  }
  0x24   :  { %1284 = vmatpush1.bf16.msra.mxu0 %v1897_v35  ;;  %1043 = vmatprep.subr.bf16.mxu1 %v1898_v36  ;;  %v1988_v35 = vld [vmem:[%s2652_s1 + $0x160] ss:$8 sps:$4 sm:$0xff]  }
  0x25   :  { %1285 = vmatprep.subr.bf16.mxu0 %v1900_v37  ;;  %v1991_v36 = vld [vmem:[%s2651_s0 + $0xe4] ss:$28 sps:$4 sm:$0xff]   ;;  %v1993_v37 = vld [vmem:[%s2651_s0 + $0xf4] ss:$28 sps:$4 sm:$0xff]  }
  0x27   :  { %1044 = vmatpush1.bf16.msra.mxu1 %v1902_v38  ;;  %v1998_v38 = vld [vmem:[%s2652_s1 + $0x174] ss:$8 sps:$4 sm:$0xff]  }
  0x28   :  { %1286 = vmatpush1.bf16.msra.mxu0 %v1903_v39  ;;  %1045 = vmatprep.subr.bf16.mxu1 %v1904_v40  ;;  %v1996_v39 = vld [vmem:[%s2652_s1 + $0x170] ss:$8 sps:$4 sm:$0xff]   ;;  %v1995_v40 = vld [vmem:[%s2651_s0 + $0xe0] ss:$28 sps:$4 sm:$0xff]  }
  0x29   :  { %1287 = vmatprep.subr.bf16.mxu0 %v1906_v41  ;;  %v2002_v41 = vld [vmem:[%s2652_s1 + $0x184] ss:$8 sps:$4 sm:$0xff]  }
  0x2b   :  { %1046 = vmatpush1.bf16.msra.mxu1 %v1908_v42  ;;  %v1999_v42 = vld [vmem:[%s2651_s0 + $0xf0] ss:$28 sps:$4 sm:$0xff]  }
  0x2c   :  { %1288 = vmatpush1.bf16.msra.mxu0 %v1909_v43  ;;  %1047 = vmatprep.subr.bf16.mxu1 %v1910_v44  ;;  %v2000_v43 = vld [vmem:[%s2652_s1 + $0x180] ss:$8 sps:$4 sm:$0xff]   ;;  %v2003_v44 = vld [vmem:[%s2651_s0 + $0x11c] ss:$28 sps:$4 sm:$0xff]  }
  0x2d   :  { %1289 = vmatprep.subr.bf16.mxu0 %v1912_v45  ;;  %v2005_v45 = vld [vmem:[%s2651_s0 + $0x12c] ss:$28 sps:$4 sm:$0xff]  }
  0x2f   :  { %1048 = vmatpush1.bf16.msra.mxu1 %v1914_v46  ;;  %v2011_v46 = vld [vmem:[%s2652_s1 + $0x194] ss:$8 sps:$4 sm:$0xff]  }
  0x30   :  { %1290 = vmatpush1.bf16.msra.mxu0 %v1915_v47  ;;  %1049 = vmatprep.subr.bf16.mxu1 %v1916_v48  ;;  %v2009_v47 = vld [vmem:[%s2652_s1 + $0x190] ss:$8 sps:$4 sm:$0xff]  }
  0x31   :  { %1291 = vmatprep.subr.bf16.mxu0 %v1918_v50  ;;  %v2007_v48 = vld [vmem:[%s2651_s0 + $0x118] ss:$28 sps:$4 sm:$0xff]   ;;  %v2008_v50 = vld [vmem:[%s2651_s0 + $0x128] ss:$28 sps:$4 sm:$0xff]  }
  0x33   :  { %1050 = vmatpush1.bf16.msra.mxu1 %v1920_v52  ;;  %v2015_v52 = vld [vmem:[%s2651_s0 + $0x154] ss:$28 sps:$4 sm:$0xff]  }
  0x34   :  { %1292 = vmatpush1.bf16.msra.mxu0 %v1921_v53  ;;  %1051 = vmatprep.subr.bf16.mxu1 %v1922_v54  ;;  %v2017_v53 = vld [vmem:[%s2651_s0 + $0x164] ss:$28 sps:$4 sm:$0xff]   ;;  %v2026_v54 = vld [vmem:[%s2652_s1 + $0x1b4] ss:$8 sps:$4 sm:$0xff]  }
  0x35   :  { %1293 = vmatprep.subr.bf16.mxu0 %v1924_v55  ;;  %v2024_v55 = vld [vmem:[%s2652_s1 + $0x1b0] ss:$8 sps:$4 sm:$0xff]  }
  0x37   :  { %1052 = vmatpush1.bf16.msra.mxu1 %v1926_v56  ;;  %v2029_v56 = vld [vmem:[%s2652_s1 + $0x1c4] ss:$8 sps:$4 sm:$0xff]  }
  0x38   :  { %1294 = vmatpush1.bf16.msra.mxu0 %v1927_v57  ;;  %1053 = vmatprep.subr.bf16.mxu1 %v1928_v58 }
  0x39   :  { %1295 = vmatprep.subr.bf16.mxu0 %v1930_v59 }
  0x3b   :  { %1054 = vmatpush1.bf16.msra.mxu1 %v1932_v60 }
  0x3c   :  { %1296 = vmatpush1.bf16.msra.mxu0 %v1933_v61  ;;  %1055 = vmatprep.subr.bf16.mxu1 %v1934_v62 }
  0x3d   :  { %1297 = vmatprep.subr.bf16.mxu0 %v1936_v63 }
  0x3f   :  { %1056 = vmatpush1.bf16.msra.mxu1 %v1938_v0 }
  0x40   :  { %1298 = vmatpush1.bf16.msra.mxu0 %v1939_v1  ;;  %1146 = vmatprep.subr.bf16.mxu1 %v1948_v2 }
  0x41   :  { %1388 = vmatprep.subr.bf16.mxu0 %v1951_v4 }
  0x42   :  { %1058 = vmatmul.mubr.bf16.vlgmr.msra.gmra.mrb[0].mxu1 %v1940_v3 }
  0x43   :  { %1300 = vmatmul.mubr.bf16.vlgmr.msra.gmra.mrb[0].mxu0 %v1943_v5  ;;  %1147 = vmatpush1.bf16.msra.mxu1 %v1946_v6 }
  0x44   :  { %1389 = vmatpush1.bf16.msra.mxu0 %v1949_v7  ;;  %1148 = vmatprep.subr.bf16.mxu1 %v1954_v8 }
  0x45   :  { %1067 = vmatprep.mubr.bf16.mxu1 %v1955_v9  ;;  %1309 = vmatprep.mubr.bf16.mxu0 %v1957_v10 }
  0x46   :  { %1390 = vmatprep.subr.bf16.mxu0 %v1987_v11 }
  0x47   :  { %1149 = vmatpush1.bf16.msra.mxu1 %v1952_v12 }
  0x48   :  { %1391 = vmatpush1.bf16.msra.mxu0 %v1985_v13  ;;  %1150 = vmatprep.subr.bf16.mxu1 %v1963_v14 }
  0x49   :  { %1392 = vmatprep.subr.bf16.mxu0 %v2023_v28 }
  0x4a   :  { %1068 = vmatmul.mubr.bf16.gmra.mrb[4].mxu1 %v1959_v15 }
  0x4b   :  { %1310 = vmatmul.mubr.bf16.gmra.mrb[4].mxu0 %v1960_v16  ;;  %1151 = vmatpush1.bf16.msra.mxu1 %v1961_v17 }
  0x4c   :  { %1077 = vmatprep.mubr.bf16.mxu1 %v1967_v19  ;;  %1152 = vmatprep.subr.bf16.mxu1 %v1966_v18 }
  0x4d   :  { %1319 = vmatprep.mubr.bf16.mxu0 %v1969_v20  ;;  %1393 = vmatpush1.bf16.msra.mxu0 %v2021_v27 }
  0x4f   :  { %1153 = vmatpush1.bf16.msra.mxu1 %v1964_v21 }
  0x50   :  { %1154 = vmatprep.subr.bf16.mxu1 %v1975_v24 }
  0x52   :  { %1078 = vmatmul.mubr.bf16.gmra.mrb[8].mxu1 %v1971_v22 }
  0x53   :  { %1320 = vmatmul.mubr.bf16.gmra.mrb[8].mxu0 %v1972_v23  ;;  %1155 = vmatpush1.bf16.msra.mxu1 %v1973_v25 }
  0x54   :  { %1087 = vmatprep.mubr.bf16.mxu1 %v1976_v26  ;;  %1156 = vmatprep.subr.bf16.mxu1 %v1980_v29 }
  0x55   :  { %1329 = vmatprep.mubr.bf16.mxu0 %v1981_v30 }
  0x57   :  { %1157 = vmatpush1.bf16.msra.mxu1 %v1978_v31 }
  0x58   :  { %1158 = vmatprep.subr.bf16.mxu1 %v1990_v32 }
  0x5a   :  { %1088 = vmatmul.mubr.bf16.gmra.mrb[12].mxu1 %v1983_v33 }
  0x5b   :  { %1330 = vmatmul.mubr.bf16.gmra.mrb[12].mxu0 %v1984_v34  ;;  %1159 = vmatpush1.bf16.msra.mxu1 %v1988_v35 }
  0x5c   :  { %1097 = vmatprep.mubr.bf16.mxu1 %v1991_v36  ;;  %1339 = vmatprep.mubr.bf16.mxu0 %v1993_v37 }
  0x5d   :  { %1160 = vmatprep.subr.bf16.mxu1 %v1998_v38 }
  0x5f   :  { %1161 = vmatpush1.bf16.msra.mxu1 %v1996_v39 }
  0x60   :  { %1162 = vmatprep.subr.bf16.mxu1 %v2002_v41 }
  0x62   :  { %1098 = vmatmul.mubr.bf16.gmra.mrb[16].mxu1 %v1995_v40 }
  0x63   :  { %1340 = vmatmul.mubr.bf16.gmra.mrb[16].mxu0 %v1999_v42  ;;  %1163 = vmatpush1.bf16.msra.mxu1 %v2000_v43 }
  0x64   :  { %1107 = vmatprep.mubr.bf16.mxu1 %v2003_v44  ;;  %1349 = vmatprep.mubr.bf16.mxu0 %v2005_v45 }
  0x65   :  { %1164 = vmatprep.subr.bf16.mxu1 %v2011_v46 }
  0x67   :  { %1165 = vmatpush1.bf16.msra.mxu1 %v2009_v47 }
  0x68   :  { %1166 = vmatprep.subr.bf16.mxu1 %v2014_v49 }
  0x6a   :  { %1108 = vmatmul.mubr.bf16.gmra.mrb[20].mxu1 %v2007_v48 }
  0x6b   :  { %1350 = vmatmul.mubr.bf16.gmra.mrb[20].mxu0 %v2008_v50  ;;  %1167 = vmatpush1.bf16.msra.mxu1 %v2012_v51 }
  0x6c   :  { %1117 = vmatprep.mubr.bf16.mxu1 %v2015_v52  ;;  %1359 = vmatprep.mubr.bf16.mxu0 %v2017_v53 }
  0x6d   :  { %1168 = vmatprep.subr.bf16.mxu1 %v2026_v54 }
  0x6e   :  { %7 = vsyncpa [#allocation3], 0  ;;  %v2019_v57 = vld [vmem:[%s2651_s0 + $0x150] ss:$28 sps:$4 sm:$0xff]   ;;  %v2020_v58 = vld [vmem:[%s2651_s0 + $0x160] ss:$28 sps:$4 sm:$0xff]  }
  0x6f   :  { %1169 = vmatpush1.bf16.msra.mxu1 %v2024_v55  ;;  %v2027_v59 = vld [vmem:[%s2652_s1 + $0x1c0] ss:$8 sps:$4 sm:$0xff]   ;;  %v2032_v61 = vld [vmem:[%s2651_s0 + $0x19c] ss:$28 sps:$4 sm:$0xff]   ;;  %v2042_v1 = vld [vmem:[%s2652_s1 + $0x1e4] ss:$8 sps:$4 sm:$0xff]  }
  0x70   :  { %v2030_v60 = vld [vmem:[%s2651_s0 + $0x18c] ss:$28 sps:$4 sm:$0xff]   ;;  %1170 = vmatprep.subr.bf16.mxu1 %v2029_v56  ;;  %v2038_v62 = vld [vmem:[%s2652_s1 + $0x1d4] ss:$8 sps:$4 sm:$0xff]   ;;  %v2036_v63 = vld [vmem:[%s2652_s1 + $0x1d0] ss:$8 sps:$4 sm:$0xff]  }
  0x71   :  { %v77_v0 = vld [vmem:[%s2651_s0 + $0x1c0] sm:$0xff]  ;;  %v79_v2 = vld [vmem:[%s2651_s0 + $0x1d0] sm:$0xff]  ;;  %v2051_v12 = vld [vmem:[%s2651_s0 + $0xc] ss:$28 sps:$4 sm:$0xff]   ;;  %v2108_v13 = vmov 0   ;;  %vm997_vm0 = vcmask 392192  }
  0x72   :  { %1118 = vmatmul.mubr.bf16.gmra.mrb[24].mxu1 %v2019_v57  ;;  %v2034_v3 = vld [vmem:[%s2651_s0 + $0x188] ss:$28 sps:$4 sm:$0xff]   ;;  %v2035_v4 = vld [vmem:[%s2651_s0 + $0x198] ss:$28 sps:$4 sm:$0xff]   ;;  %v1617_v5 = vcombine.high %v77_v0, %v77_v0  ;;  %v1621_v6 = vcombine.high %v79_v2, %v79_v2  ;;  %v1616_v10 = vcombine.low %v77_v0, %v77_v0  ;;  %v1620_v11 = vcombine.low %v79_v2, %v79_v2  ;;  %v2055_v17 = vld [vmem:[%s2651_s0 + $0x40] ss:$28 sps:$4 sm:$0xff]  }
  0x73   :  { %1360 = vmatmul.mubr.bf16.gmra.mrb[24].mxu0 %v2020_v58  ;;  %1127 = vmatprep.mubr.bf16.mxu1 %v2030_v60  ;;  %v2040_v7 = vld [vmem:[%s2652_s1 + $0x1e0] ss:$8 sps:$4 sm:$0xff]   ;;  %v2048_v8 = vld [vmem:[%s2652_s1 + $0x1f4] ss:$8 sps:$4 sm:$0xff]   ;;  %v2046_v9 = vld [vmem:[%s2652_s1 + $0x1f0] ss:$8 sps:$4 sm:$0xff]  }
  0x74   :  { %1171 = vmatpush1.bf16.msra.mxu1 %v2027_v59  ;;  %1369 = vmatprep.mubr.bf16.mxu0 %v2032_v61  ;;  %v2049_v14 = vld [vmem:[%s2651_s0 + $0x8] ss:$28 sps:$4 sm:$0xff]   ;;  %v2052_v15 = vld [vmem:[%s2651_s0 + $0x18] ss:$28 sps:$4 sm:$0xff]   ;;  %v2056_v18 = vld [vmem:[%s2651_s0 + $0x50] ss:$28 sps:$4 sm:$0xff]  }
  0x75   :  { %1172 = vmatprep.subr.bf16.mxu1 %v2038_v62  ;;  %v2053_v16 = vld [vmem:[%s2651_s0 + $0x44] ss:$28 sps:$4 sm:$0xff]   ;;  %v2057_v19 = vld [vmem:[%s2651_s0 + $0x7c] ss:$28 sps:$4 sm:$0xff]   ;;  %v2061_v22 = vld [vmem:[%s2651_s0 + $0xb4] ss:$28 sps:$4 sm:$0xff]  }
  0x76   :  { %v2059_v20 = vld [vmem:[%s2651_s0 + $0x78] ss:$28 sps:$4 sm:$0xff]   ;;  %v2060_v21 = vld [vmem:[%s2651_s0 + $0x88] ss:$28 sps:$4 sm:$0xff]   ;;  %v2063_v23 = vld [vmem:[%s2651_s0 + $0xb0] ss:$28 sps:$4 sm:$0xff]  }
  0x77   :  { %v2064_v24 = vld [vmem:[%s2651_s0 + $0xc0] ss:$28 sps:$4 sm:$0xff]   ;;  %v2065_v25 = vld [vmem:[%s2651_s0 + $0xec] ss:$28 sps:$4 sm:$0xff]   ;;  %v2068_v27 = vld [vmem:[%s2651_s0 + $0xf8] ss:$28 sps:$4 sm:$0xff]  }
  0x78   :  { %1173 = vmatpush1.bf16.msra.mxu1 %v2036_v63  ;;  %v2067_v26 = vld [vmem:[%s2651_s0 + $0xe8] ss:$28 sps:$4 sm:$0xff]   ;;  %v2071_v29 = vld [vmem:[%s2651_s0 + $0x120] ss:$28 sps:$4 sm:$0xff]   ;;  %v2072_v30 = vld [vmem:[%s2651_s0 + $0x130] ss:$28 sps:$4 sm:$0xff]  }
  0x79   :  { %1174 = vmatprep.subr.bf16.mxu1 %v2042_v1  ;;  %v2069_v28 = vld [vmem:[%s2651_s0 + $0x124] ss:$28 sps:$4 sm:$0xff]   ;;  %v2073_v31 = vld [vmem:[%s2651_s0 + $0x15c] ss:$28 sps:$4 sm:$0xff]   ;;  %v2077_v34 = vld [vmem:[%s2651_s0 + $0x194] ss:$28 sps:$4 sm:$0xff]  }
  0x7a   :  { %1128 = vmatmul.mubr.bf16.gmra.mrb[28].mxu1 %v2034_v3  ;;  %v2075_v32 = vld [vmem:[%s2651_s0 + $0x158] ss:$28 sps:$4 sm:$0xff]   ;;  %v2076_v33 = vld [vmem:[%s2651_s0 + $0x168] ss:$28 sps:$4 sm:$0xff]   ;;  %v2079_v36 = vld [vmem:[%s2651_s0 + $0x190] ss:$28 sps:$4 sm:$0xff]  }
  0x7b   :  { %1370 = vmatmul.mubr.bf16.gmra.mrb[28].mxu0 %v2035_v4  ;;  %1137 = vmatprep.mubr.bf16.mxu1 %v1617_v5  ;;  %v78_v35 = vld [vmem:[%s2651_s0 + $0x1c8] sm:$0xff]  ;;  %v2080_v37 = vld [vmem:[%s2651_s0 + $0x1a0] ss:$28 sps:$4 sm:$0xff]   ;;  %v2083_v40 = vld [vmem:[%s2651_s0 + $0x1d8] ss:$0 sps:$4 sm:$0xff]   ;;  %vm1510_vm1 = vcmask 556032  }
  0x7c   :  { %1379 = vmatprep.mubr.bf16.mxu0 %v1621_v6  ;;  %1175 = vmatpush1.bf16.msra.mxu1 %v2040_v7  ;;  %v1619_v38 = vcombine.high %v78_v35, %v78_v35  ;;  %v1618_v39 = vcombine.low %v78_v35, %v78_v35  ;;  %s2109_s0 = smov [#allocation2]  }
  0x7d   :  { %1176 = vmatprep.subr.bf16.mxu1 %v2048_v8  ;;  %s1549_s23 = sshll.u32 %s2109_s0, 4  ;;  %s1550_s23 = int_to_ptr.vmem [resolvable:$true] %s1549_s23 }
  0x7e   :  { %s2084_s24 = scalar_lea.vmem %s1550_s23, 4352  ;;  %p2089_p1 = scmp.lt.s32.totalorder %s1550_s23, %s1550_s23 }
  0x7f   :  { %p2085_p0 = scmp.ne.s32.totalorder %s1550_s23, %s2084_s24  ;;  %p2090_p2 = scmp.lt.s32.totalorder %s2084_s24, %s2084_s24 }
  0x80   :  { %1177 = vmatpush1.bf16.msra.mxu1 %v2046_v9 }
  0x81   :  { %p2091_p3 = por %p2090_p2, %p2089_p1 }
  0x82   :  { %1138 = vmatmul.mubr.bf16.gmra.mrb[32].mxu1 %v1616_v10 }
  0x83   :  { %1380 = vmatmul.mubr.bf16.gmra.mrb[32].mxu0 %v1620_v11  ;;  %1178 = vmatprep.mubr.bf16.mxu1 %v2051_v12  ;;  %p2092_p4 = pnand %p2091_p3, %p2085_p0 }
  0x84   :  { %1420 = vmatprep.mubr.bf16.mxu0 %v2108_v13 }
  0x8a   :  { %1179 = vmatmul.mubr.bf16.vlgmr.msra.gmra.mrb[0].mxu1 %v2049_v14 }
  0x8b   :  { %1725 = vmatmul.mubr.msk.bf16.vlgmr.msra.gmra.mrb[0].mxu0 %vm997_vm0, %v2052_v15  ;;  %1188 = vmatprep.mubr.bf16.mxu1 %v2053_v16 }
  0x8c   :  { %1430 = vmatprep.mubr.bf16.mxu0 %v2108_v13 }
  0x92   :  { %1189 = vmatmul.mubr.bf16.gmra.mrb[4].mxu1 %v2055_v17 }
  0x93   :  { %1726 = vmatmul.mubr.msk.bf16.gmra.mrb[4].mxu0 %vm997_vm0, %v2056_v18  ;;  %1198 = vmatprep.mubr.bf16.mxu1 %v2057_v19 }
  0x94   :  { %1440 = vmatprep.mubr.bf16.mxu0 %v2108_v13 }
  0x9a   :  { %1199 = vmatmul.mubr.bf16.gmra.mrb[8].mxu1 %v2059_v20 }
  0x9b   :  { %1727 = vmatmul.mubr.msk.bf16.gmra.mrb[8].mxu0 %vm997_vm0, %v2060_v21  ;;  %1208 = vmatprep.mubr.bf16.mxu1 %v2061_v22 }
  0x9c   :  { %1450 = vmatprep.mubr.bf16.mxu0 %v2108_v13 }
  0xa2   :  { %1209 = vmatmul.mubr.bf16.gmra.mrb[12].mxu1 %v2063_v23 }
  0xa3   :  { %1728 = vmatmul.mubr.msk.bf16.gmra.mrb[12].mxu0 %vm997_vm0, %v2064_v24  ;;  %1218 = vmatprep.mubr.bf16.mxu1 %v2065_v25 }
  0xa4   :  { %1460 = vmatprep.mubr.bf16.mxu0 %v2108_v13 }
  0xaa   :  { %1219 = vmatmul.mubr.bf16.gmra.mrb[16].mxu1 %v2067_v26 }
  0xab   :  { %1729 = vmatmul.mubr.msk.bf16.gmra.mrb[16].mxu0 %vm997_vm0, %v2068_v27  ;;  %1228 = vmatprep.mubr.bf16.mxu1 %v2069_v28 }
  0xac   :  { %1470 = vmatprep.mubr.bf16.mxu0 %v2108_v13 }
  0xb2   :  { %1229 = vmatmul.mubr.bf16.gmra.mrb[20].mxu1 %v2071_v29 }
  0xb3   :  { %1730 = vmatmul.mubr.msk.bf16.gmra.mrb[20].mxu0 %vm997_vm0, %v2072_v30  ;;  %1238 = vmatprep.mubr.bf16.mxu1 %v2073_v31 }
  0xb4   :  { %1480 = vmatprep.mubr.bf16.mxu0 %v2108_v13 }
  0xba   :  { %1239 = vmatmul.mubr.bf16.gmra.mrb[24].mxu1 %v2075_v32 }
  0xbb   :  { %1731 = vmatmul.mubr.msk.bf16.gmra.mrb[24].mxu0 %vm997_vm0, %v2076_v33  ;;  %1248 = vmatprep.mubr.bf16.mxu1 %v2077_v34 }
  0xbc   :  { %1490 = vmatprep.mubr.bf16.mxu0 %v2108_v13 }
  0xc2   :  { %1249 = vmatmul.mubr.bf16.gmra.mrb[28].mxu1 %v2079_v36 }
  0xc3   :  { %1732 = vmatmul.mubr.msk.bf16.gmra.mrb[28].mxu0 %vm997_vm0, %v2080_v37  ;;  %1258 = vmatprep.mubr.bf16.mxu1 %v1619_v38 }
  0xc4   :  { %1500 = vmatprep.mubr.bf16.mxu0 %v2108_v13 }
  0xca   :  { %1259 = vmatmul.mubr.bf16.gmra.mrb[32].mxu1 %v1618_v39 }
  0xcb   :  { %1733 = vmatmul.mubr.msk.bf16.gmra.mrb[32].mxu0 %vm997_vm0, %v2083_v40 }
 0x15d   :  { %v1180_v41 = vpop.f32.mrb[0].mxu1 }
 0x15e   :  { %v1422_v42 = vpop.f32.mrb[0].mxu0  ;;  %v1182_v44 = vpop.f32.mrb[1].mxu1 }
 0x15f   :  { %v1734_v43 = vadd.f32 %v1422_v42, %v1180_v41  ;;  %v1424_v45 = vpop.f32.mrb[1].mxu0  ;;  %v1184_v47 = vpop.f32.mrb[2].mxu1 }
 0x160   :  { %v1735_v46 = vadd.f32 %v1424_v45, %v1182_v44  ;;  %v1426_v48 = vpop.f32.mrb[2].mxu0  ;;  %v1186_v50 = vpop.f32.mrb[3].mxu1 }
 0x161   :  { %1509 = vst [vmem:[#allocation2] sm:$0xff] %v1734_v43  ;;  %v1736_v49 = vadd.f32 %v1426_v48, %v1184_v47  ;;  %v1428_v51 = vpop.f32.mrb[3].mxu0 }
 0x162   :  { %1511 = vst.msk [vmem:[#allocation2 + $0x8] sm:$0xff] %vm1510_vm1, %v1735_v46  ;;  %v1737_v52 = vadd.f32 %v1428_v51, %v1186_v50 }
 0x163   :  { %1512 = vst [vmem:[#allocation2 + $0x10] sm:$0xff] %v1736_v49 }
 0x164   :  { %1513 = vst.msk [vmem:[#allocation2 + $0x18] sm:$0xff] %vm1510_vm1, %v1737_v52 }
 0x165   :  { %v1190_v53 = vpop.f32.mrb[4].mxu1 }
 0x166   :  { %v1432_v54 = vpop.f32.mrb[4].mxu0  ;;  %v1192_v56 = vpop.f32.mrb[5].mxu1 }
 0x167   :  { %v1738_v55 = vadd.f32 %v1432_v54, %v1190_v53  ;;  %v1434_v57 = vpop.f32.mrb[5].mxu0  ;;  %v1194_v59 = vpop.f32.mrb[6].mxu1 }
 0x168   :  { %v1739_v58 = vadd.f32 %v1434_v57, %v1192_v56  ;;  %v1436_v60 = vpop.f32.mrb[6].mxu0  ;;  %v1196_v62 = vpop.f32.mrb[7].mxu1 }
 0x169   :  { %1514 = vst [vmem:[#allocation2 + $0x20] sm:$0xff] %v1738_v55  ;;  %v1740_v61 = vadd.f32 %v1436_v60, %v1194_v59  ;;  %v1438_v63 = vpop.f32.mrb[7].mxu0 }
 0x16a   :  { %1515 = vst.msk [vmem:[#allocation2 + $0x28] sm:$0xff] %vm1510_vm1, %v1739_v58  ;;  %v1741_v0 = vadd.f32 %v1438_v63, %v1196_v62 }
 0x16b   :  { %1516 = vst [vmem:[#allocation2 + $0x30] sm:$0xff] %v1740_v61 }
 0x16c   :  { %1517 = vst.msk [vmem:[#allocation2 + $0x38] sm:$0xff] %vm1510_vm1, %v1741_v0 }
 0x16d   :  { %v1200_v1 = vpop.f32.mrb[8].mxu1 }
 0x16e   :  { %v1442_v2 = vpop.f32.mrb[8].mxu0  ;;  %v1202_v4 = vpop.f32.mrb[9].mxu1 }
 0x16f   :  { %v1742_v3 = vadd.f32 %v1442_v2, %v1200_v1  ;;  %v1444_v5 = vpop.f32.mrb[9].mxu0  ;;  %v1204_v7 = vpop.f32.mrb[10].mxu1 }
 0x170   :  { %v1743_v6 = vadd.f32 %v1444_v5, %v1202_v4  ;;  %v1446_v8 = vpop.f32.mrb[10].mxu0  ;;  %v1206_v10 = vpop.f32.mrb[11].mxu1 }
 0x171   :  { %1518 = vst [vmem:[#allocation2 + $0x40] sm:$0xff] %v1742_v3  ;;  %v1744_v9 = vadd.f32 %v1446_v8, %v1204_v7  ;;  %v1448_v11 = vpop.f32.mrb[11].mxu0 }
 0x172   :  { %1519 = vst.msk [vmem:[#allocation2 + $0x48] sm:$0xff] %vm1510_vm1, %v1743_v6  ;;  %v1745_v12 = vadd.f32 %v1448_v11, %v1206_v10 }
 0x173   :  { %1520 = vst [vmem:[#allocation2 + $0x50] sm:$0xff] %v1744_v9 }
 0x174   :  { %1521 = vst.msk [vmem:[#allocation2 + $0x58] sm:$0xff] %vm1510_vm1, %v1745_v12 }
 0x175   :  { %v1210_v13 = vpop.f32.mrb[12].mxu1 }
 0x176   :  { %v1452_v14 = vpop.f32.mrb[12].mxu0  ;;  %v1212_v16 = vpop.f32.mrb[13].mxu1 }
 0x177   :  { %v1746_v15 = vadd.f32 %v1452_v14, %v1210_v13  ;;  %v1454_v17 = vpop.f32.mrb[13].mxu0  ;;  %v1214_v19 = vpop.f32.mrb[14].mxu1 }
 0x178   :  { %v1747_v18 = vadd.f32 %v1454_v17, %v1212_v16  ;;  %v1456_v20 = vpop.f32.mrb[14].mxu0  ;;  %v1216_v22 = vpop.f32.mrb[15].mxu1 }
 0x179   :  { %1522 = vst [vmem:[#allocation2 + $0x60] sm:$0xff] %v1746_v15  ;;  %v1748_v21 = vadd.f32 %v1456_v20, %v1214_v19  ;;  %v1458_v23 = vpop.f32.mrb[15].mxu0 }
 0x17a   :  { %1523 = vst.msk [vmem:[#allocation2 + $0x68] sm:$0xff] %vm1510_vm1, %v1747_v18  ;;  %v1749_v24 = vadd.f32 %v1458_v23, %v1216_v22 }
 0x17b   :  { %1524 = vst [vmem:[#allocation2 + $0x70] sm:$0xff] %v1748_v21 }
 0x17c   :  { %1525 = vst.msk [vmem:[#allocation2 + $0x78] sm:$0xff] %vm1510_vm1, %v1749_v24 }
 0x17d   :  { %v1220_v25 = vpop.f32.mrb[16].mxu1 }
 0x17e   :  { %v1462_v26 = vpop.f32.mrb[16].mxu0  ;;  %v1222_v28 = vpop.f32.mrb[17].mxu1 }
 0x17f   :  { %v1750_v27 = vadd.f32 %v1462_v26, %v1220_v25  ;;  %v1464_v29 = vpop.f32.mrb[17].mxu0  ;;  %v1224_v31 = vpop.f32.mrb[18].mxu1 }
 0x180   :  { %v1751_v30 = vadd.f32 %v1464_v29, %v1222_v28  ;;  %v1466_v32 = vpop.f32.mrb[18].mxu0  ;;  %v1226_v34 = vpop.f32.mrb[19].mxu1 }
 0x181   :  { %1526 = vst [vmem:[#allocation2 + $0x80] sm:$0xff] %v1750_v27  ;;  %v1752_v33 = vadd.f32 %v1466_v32, %v1224_v31  ;;  %v1468_v35 = vpop.f32.mrb[19].mxu0 }
 0x182   :  { %1527 = vst.msk [vmem:[#allocation2 + $0x88] sm:$0xff] %vm1510_vm1, %v1751_v30  ;;  %v1753_v36 = vadd.f32 %v1468_v35, %v1226_v34 }
 0x183   :  { %1528 = vst [vmem:[#allocation2 + $0x90] sm:$0xff] %v1752_v33 }
 0x184   :  { %1529 = vst.msk [vmem:[#allocation2 + $0x98] sm:$0xff] %vm1510_vm1, %v1753_v36 }
 0x185   :  { %v1230_v37 = vpop.f32.mrb[20].mxu1 }
 0x186   :  { %v1472_v38 = vpop.f32.mrb[20].mxu0  ;;  %v1232_v40 = vpop.f32.mrb[21].mxu1 }
 0x187   :  { %v1754_v39 = vadd.f32 %v1472_v38, %v1230_v37  ;;  %v1474_v41 = vpop.f32.mrb[21].mxu0  ;;  %v1234_v43 = vpop.f32.mrb[22].mxu1 }
 0x188   :  { %v1755_v42 = vadd.f32 %v1474_v41, %v1232_v40  ;;  %v1476_v44 = vpop.f32.mrb[22].mxu0  ;;  %v1236_v46 = vpop.f32.mrb[23].mxu1 }
 0x189   :  { %1530 = vst [vmem:[#allocation2 + $0xa0] sm:$0xff] %v1754_v39  ;;  %v1756_v45 = vadd.f32 %v1476_v44, %v1234_v43  ;;  %v1478_v47 = vpop.f32.mrb[23].mxu0 }
 0x18a   :  { %1531 = vst.msk [vmem:[#allocation2 + $0xa8] sm:$0xff] %vm1510_vm1, %v1755_v42  ;;  %v1757_v48 = vadd.f32 %v1478_v47, %v1236_v46 }
 0x18b   :  { %1532 = vst [vmem:[#allocation2 + $0xb0] sm:$0xff] %v1756_v45 }
 0x18c   :  { %1533 = vst.msk [vmem:[#allocation2 + $0xb8] sm:$0xff] %vm1510_vm1, %v1757_v48 }
 0x18d   :  { %v1240_v49 = vpop.f32.mrb[24].mxu1 }
 0x18e   :  { %v1482_v50 = vpop.f32.mrb[24].mxu0  ;;  %v1242_v52 = vpop.f32.mrb[25].mxu1 }
 0x18f   :  { %v1758_v51 = vadd.f32 %v1482_v50, %v1240_v49  ;;  %v1484_v53 = vpop.f32.mrb[25].mxu0  ;;  %v1244_v55 = vpop.f32.mrb[26].mxu1 }
 0x190   :  { %v1759_v54 = vadd.f32 %v1484_v53, %v1242_v52  ;;  %v1486_v56 = vpop.f32.mrb[26].mxu0  ;;  %v1246_v58 = vpop.f32.mrb[27].mxu1 }
 0x191   :  { %1534 = vst [vmem:[#allocation2 + $0xc0] sm:$0xff] %v1758_v51  ;;  %v1760_v57 = vadd.f32 %v1486_v56, %v1244_v55  ;;  %v1488_v59 = vpop.f32.mrb[27].mxu0 }
 0x192   :  { %1535 = vst.msk [vmem:[#allocation2 + $0xc8] sm:$0xff] %vm1510_vm1, %v1759_v54  ;;  %v1761_v60 = vadd.f32 %v1488_v59, %v1246_v58 }
 0x193   :  { %1536 = vst [vmem:[#allocation2 + $0xd0] sm:$0xff] %v1760_v57 }
 0x194   :  { %1537 = vst.msk [vmem:[#allocation2 + $0xd8] sm:$0xff] %vm1510_vm1, %v1761_v60 }
 0x195   :  { %v1250_v61 = vpop.f32.mrb[28].mxu1 }
 0x196   :  { %v1492_v62 = vpop.f32.mrb[28].mxu0  ;;  %v1252_v0 = vpop.f32.mrb[29].mxu1 }
 0x197   :  { %v1762_v63 = vadd.f32 %v1492_v62, %v1250_v61  ;;  %v1494_v1 = vpop.f32.mrb[29].mxu0  ;;  %v1254_v3 = vpop.f32.mrb[30].mxu1 }
 0x198   :  { %v1763_v2 = vadd.f32 %v1494_v1, %v1252_v0  ;;  %v1496_v4 = vpop.f32.mrb[30].mxu0  ;;  %v1256_v6 = vpop.f32.mrb[31].mxu1 }
 0x199   :  { %1538 = vst [vmem:[#allocation2 + $0xe0] sm:$0xff] %v1762_v63  ;;  %v1764_v5 = vadd.f32 %v1496_v4, %v1254_v3  ;;  %v1498_v7 = vpop.f32.mrb[31].mxu0 }
 0x19a   :  { %1539 = vst.msk [vmem:[#allocation2 + $0xe8] sm:$0xff] %vm1510_vm1, %v1763_v2  ;;  %v1765_v8 = vadd.f32 %v1498_v7, %v1256_v6 }
 0x19b   :  { %1540 = vst [vmem:[#allocation2 + $0xf0] sm:$0xff] %v1764_v5 }
 0x19c   :  { %1541 = vst.msk [vmem:[#allocation2 + $0xf8] sm:$0xff] %vm1510_vm1, %v1765_v8 }
 0x19d   :  { %v1260_v9 = vpop.f32.mrb[32].mxu1 }
 0x19e   :  { %v1502_v10 = vpop.f32.mrb[32].mxu0  ;;  %v1262_v12 = vpop.f32.mrb[33].mxu1 }
 0x19f   :  { %v1766_v11 = vadd.f32 %v1502_v10, %v1260_v9  ;;  %v1504_v13 = vpop.f32.mrb[33].mxu0  ;;  %v1264_v15 = vpop.f32.mrb[34].mxu1 }
 0x1a0   :  { %v1767_v14 = vadd.f32 %v1504_v13, %v1262_v12  ;;  %v1506_v16 = vpop.f32.mrb[34].mxu0  ;;  %v1265_v17 = vpop.f32.mrb[35].mxu1 }
 0x1a1   :  { %1542 = vst [vmem:[#allocation2 + $0x100] sm:$0xff] %v1766_v11  ;;  %v1507_v18 = vpop.f32.mrb[35].mxu0 }
 0x1a2   :  { %1543 = vst.msk [vmem:[#allocation2 + $0x108] sm:$0xff] %vm1510_vm1, %v1767_v14 }
 0x1a3   :  { %2095 = shalt.err (!%p2092_p4)
}
 0x1a4   :  { %s2096_s27 = scalar_lea.hbm %s2653_s2, 4352 }
 0x1a5   :  { %p2097_p5 = scmp.ne.s32.totalorder %s2653_s2, %s2096_s27  ;;  %p2100_p6 = scmp.lt.u32.totalorder %s2096_s27, %s2653_s2 }
 0x1a7   :  { %p2102_p7 = pnand %p2100_p6, %p2097_p5 }
 0x1a9   :  { %2105 = shalt.err (!%p2102_p7)
}
 0x1aa   :  { %s2110_s4 = smov 256   ;;  %s2111_s5 = smov 16  }
 0x1ab   :  { %1555 = dma.vmem_to_hbm [thread:$0]  %s1550_s23, 4352, %s2653_s2, [#allocation3], %s2110_s4, %s2110_s4, %s2111_s5  }
 0x1ac   :  { %2106 = dma.done.wait [#allocation3], 4352  }
 0x1ad   :  { %2107 = vsyncadd [#allocation3], 4294962944 }
 0x1ae   :  { %1559 = vsyncpa [#allocation3], 1 }

</bundles_post_ra>
